<compile_context>
chip_gen: v5e
topology: v5e:2x2
jax: 0.10.0
libtpu: 0.0.40
codegen_flags: <defaults>
</compile_context>

<pallas_src>
import functools

import jax
import jax.numpy as jnp
from jax.experimental import pallas as pl
from jax.experimental.pallas import tpu as pltpu


def _round_up(x: int, m: int) -> int:
    return (x + m - 1) // m * m


def _elu(y):
    # ELU(alpha=1): y if y > 0 else exp(y) - 1.
    # The clamp keeps the unselected branch finite; exp lowers to the EUP (a free VLIW
    # slot here), the subtract is a single VALU op (no divide).
    return jnp.where(y > 0, y, jnp.exp(jnp.minimum(y, 0.0)) - 1.0)


# ----------------------------------------------------------------------------------------
# Path 1: all weights VMEM-resident, batch-only grid, unrolled layer loop.
# ----------------------------------------------------------------------------------------
def _mlp_resident_kernel(*refs, num_layers):
    x_ref, o_ref = refs[0], refs[-1]
    wb = refs[1:-1]                                   # w0, b0, w1, b1, ...
    h = x_ref[...]                                    # already matmul_dtype
    for l in range(num_layers):
        w_ref, b_ref = wb[2 * l], wb[2 * l + 1]
        y = jnp.dot(h, w_ref[...], preferred_element_type=jnp.float32) + b_ref[...]
        if l < num_layers - 1:
            h = _elu(y).astype(w_ref.dtype)           # Dropout (eval) == identity
        else:
            o_ref[...] = y.astype(o_ref.dtype)        # last-layer W already sliced to out_p


def _run_resident(x, params, matmul_dtype, B, Bp, tm, grid_b, k_pad, n_pad, in_dim):
    L = len(params)
    in_p, out_p, max_np = k_pad[0], n_pad[-1], max(n_pad)
    mm_bytes = jnp.dtype(matmul_dtype).itemsize

    # Host-side: pad + pre-cast weights to the MXU operand dtype; biases stay f32.
    # Zero padding is inert: padded lanes stay exactly 0 through Linear (+ ELU(0)=0).
    ws, bs = [], []
    for l, (w, b) in enumerate(params):
        wp = jnp.zeros((k_pad[l], n_pad[l]), matmul_dtype)
        wp = wp.at[: w.shape[0], : w.shape[1]].set(w.astype(matmul_dtype))
        bp = jnp.zeros((1, n_pad[l]), jnp.float32)
        bp = bp.at[0, : b.shape[-1]].set(b.reshape(-1).astype(jnp.float32))
        ws.append(wp)
        bs.append(bp)

    x_pad = jnp.zeros((Bp, in_p), matmul_dtype)
    x_pad = x_pad.at[:B, :in_dim].set(x.astype(matmul_dtype))

    kernel = functools.partial(_mlp_resident_kernel, num_layers=L)

    w_bytes = sum(int(wp.size) for wp in ws) * mm_bytes
    b_bytes = sum(int(bp.size) for bp in bs) * 4
    cost = pl.CostEstimate(
        flops=2 * Bp * sum(k_pad[l] * n_pad[l] for l in range(L)),
        transcendentals=Bp * sum(n_pad[:-1]),
        bytes_accessed=Bp * in_p * mm_bytes + w_bytes + b_bytes + Bp * out_p * 4,
    )

    def build(single_buffer_weights):
        def inv_spec(shape):
            # Grid-invariant block (same block index every step).
            if single_buffer_weights:
                return pl.BlockSpec(shape, lambda i: (0,) * len(shape),
                                    pipeline_mode=pl.Buffered(1))
            return pl.BlockSpec(shape, lambda i: (0,) * len(shape))

        in_specs = [pl.BlockSpec((tm, in_p), lambda i: (i, 0))]   # pipelined batch tile
        for l in range(L):
            in_specs.append(inv_spec((k_pad[l], n_pad[l])))       # weights, VMEM-resident
            in_specs.append(inv_spec((1, n_pad[l])))              # biases (f32)

        weight_copies = 1 if single_buffer_weights else 2
        vmem_est = (weight_copies * w_bytes + b_bytes
                    + 2 * tm * in_p * mm_bytes                    # double-buffered x tile
                    + 2 * tm * out_p * 4                          # double-buffered out tile
                    + 4 * tm * max_np * 4                         # live activation copies
                    + (4 << 20))                                  # headroom
        vmem_limit = int(min(max(vmem_est, 16 << 20), 64 << 20))

        return pl.pallas_call(
            kernel,
            out_shape=jax.ShapeDtypeStruct((Bp, out_p), jnp.float32),
            grid_spec=pltpu.PrefetchScalarGridSpec(
                num_scalar_prefetch=0,
                grid=(grid_b,),
                in_specs=in_specs,
                out_specs=pl.BlockSpec((tm, out_p), lambda i: (i, 0)),  # lane-dense
            ),
            compiler_params=pltpu.CompilerParams(
                dimension_semantics=("parallel",),    # shards batch tiles across v7x's 2 TCs
                vmem_limit_bytes=vmem_limit,
            ),
            cost_estimate=cost,
        )

    flat = [x_pad]
    for wp, bp in zip(ws, bs):
        flat.extend((wp, bp))

    try:
        return build(True)(*flat)
    except Exception:
        # TODO(synk): pl.Buffered(1) not accepted by this JAX build; fall back to the
        # default double-buffering of the grid-invariant weight/bias blocks.
        return build(False)(*flat)


# ----------------------------------------------------------------------------------------
# Path 2: layer-streaming.  grid = (batch_tiles, L); only one layer's weights are resident
# (double-buffered, next layer's DMA overlaps the current matmul); the running activation
# lives in a VMEM scratch that persists across the layer axis.
# ----------------------------------------------------------------------------------------
def _mlp_streaming_kernel(x_ref, w_ref, b_ref, o_ref, h_ref, *, num_layers):
    l = pl.program_id(1)

    @pl.when(l == 0)
    def _():
        h_ref[...] = x_ref[...]

    y = jnp.dot(h_ref[...], w_ref[0], preferred_element_type=jnp.float32) + b_ref[0]

    @pl.when(l < num_layers - 1)
    def _():
        h_ref[...] = _elu(y).astype(h_ref.dtype)      # Dropout (eval) == identity

    @pl.when(l == num_layers - 1)
    def _():
        o_ref[...] = y[:, : o_ref.shape[-1]].astype(o_ref.dtype)


def _run_streaming(x, params, matmul_dtype, B, Bp, tm, grid_b, k_pad, n_pad, in_dim):
    L = len(params)
    out_p = n_pad[-1]
    Dp = max(max(k_pad), max(n_pad))                  # uniform width for the stacked weights
    mm_bytes = jnp.dtype(matmul_dtype).itemsize

    w_stack = jnp.zeros((L, Dp, Dp), matmul_dtype)
    b_stack = jnp.zeros((L, 1, Dp), jnp.float32)
    for l, (w, b) in enumerate(params):
        w_stack = w_stack.at[l, : w.shape[0], : w.shape[1]].set(w.astype(matmul_dtype))
        b_stack = b_stack.at[l, 0, : b.shape[-1]].set(b.reshape(-1).astype(jnp.float32))

    x_pad = jnp.zeros((Bp, Dp), matmul_dtype)
    x_pad = x_pad.at[:B, :in_dim].set(x.astype(matmul_dtype))

    kernel = functools.partial(_mlp_streaming_kernel, num_layers=L)

    cost = pl.CostEstimate(
        flops=2 * Bp * Dp * Dp * L,
        transcendentals=Bp * Dp * max(L - 1, 0),
        bytes_accessed=(Bp * Dp * mm_bytes + L * Dp * Dp * mm_bytes
                        + L * Dp * 4 + Bp * out_p * 4),
    )

    vmem_est = (2 * Dp * Dp * mm_bytes                # double-buffered one-layer weights
                + 2 * Dp * 4                          # double-buffered bias
                + 2 * tm * Dp * mm_bytes              # x tile
                + 2 * tm * out_p * 4                  # output tile
                + tm * Dp * mm_bytes                  # persistent activation scratch
                + 3 * tm * Dp * 4                     # live f32 accumulator copies
                + (4 << 20))
    vmem_limit = int(min(max(vmem_est, 16 << 20), 64 << 20))
    # TODO(synk): if one layer's double-buffered weights still exceed VMEM (Dp > ~4096 in
    # bf16), add K/N tiling with a pl.when-initialized f32 accumulator inside the layer.

    return pl.pallas_call(
        kernel,
        out_shape=jax.ShapeDtypeStruct((Bp, out_p), jnp.float32),
        grid_spec=pltpu.PrefetchScalarGridSpec(
            num_scalar_prefetch=0,
            grid=(grid_b, L),
            in_specs=[
                pl.BlockSpec((tm, Dp), lambda i, l: (i, 0)),
                pl.BlockSpec((1, Dp, Dp), lambda i, l: (l, 0, 0)),
                pl.BlockSpec((1, 1, Dp), lambda i, l: (l, 0, 0)),
            ],
            out_specs=pl.BlockSpec((tm, out_p), lambda i, l: (i, 0)),
            scratch_shapes=[pltpu.VMEM((tm, Dp), matmul_dtype)],
        ),
        compiler_params=pltpu.CompilerParams(
            dimension_semantics=("parallel", "arbitrary"),
            vmem_limit_bytes=vmem_limit,
        ),
        cost_estimate=cost,
    )(x_pad, w_stack, b_stack)


# ----------------------------------------------------------------------------------------
# Public wrapper.
# ----------------------------------------------------------------------------------------
def fused_mlp(x, params, *, matmul_dtype=jnp.bfloat16, max_batch_tile=128,
              resident_weight_budget=32 << 20):
    """Run the whole MLP in a single Pallas kernel (eval mode: dropout = identity).

    x: [B, in_dim] float32.  params: list of (w [in, out], b [1, out]).
    Returns [B, out_dim] float32.
    """
    B, in_dim = x.shape
    L = len(params)
    out_dim = params[-1][0].shape[1]
    mm_bytes = jnp.dtype(matmul_dtype).itemsize

    # Per-layer lane-dense padding (multiple of 128 in K and N).  Consecutive layers agree
    # automatically since layer l+1's in_features == layer l's out_features.
    k_dims = [in_dim] + [w.shape[1] for w, _ in params[:-1]]
    n_dims = [w.shape[1] for w, _ in params]
    k_pad = [_round_up(k, 128) for k in k_dims]
    n_pad = [_round_up(n, 128) for n in n_dims]

    # Batch padding / tiling: multiple of 8; >= 2 tiles when Bp >= 16 so the "parallel"
    # batch axis can use both v7x TensorCores; tile capped at max_batch_tile (default 128)
    # to bound activation VMEM pressure.
    Bp = _round_up(B, 8)
    if Bp >= 16:
        tm = min(max_batch_tile, _round_up(Bp // 2, 8))
    else:
        tm = Bp
    Bp = _round_up(Bp, tm)
    grid_b = Bp // tm

    w_bytes = sum(k_pad[l] * n_pad[l] for l in range(L)) * mm_bytes
    if w_bytes <= resident_weight_budget:
        out_pad = _run_resident(x, params, matmul_dtype, B, Bp, tm, grid_b,
                                k_pad, n_pad, in_dim)
    else:
        out_pad = _run_streaming(x, params, matmul_dtype, B, Bp, tm, grid_b,
                                 k_pad, n_pad, in_dim)
    return out_pad[:B, :out_dim]


def init_mlp_params(key, in_dim, num_layers, h_dim, out_dim, dtype=jnp.float32):
    """Deterministic PyTorch-Linear-style init: U(-1/sqrt(fan_in), 1/sqrt(fan_in))."""
    dims = []
    for i in range(num_layers - 1):
        dims.append((in_dim if i == 0 else h_dim, h_dim))
    dims.append((h_dim, out_dim))

    params = []
    for (fan_in, fan_out) in dims:
        key, kw, kb = jax.random.split(key, 3)
        bound = 1.0 / jnp.sqrt(jnp.asarray(fan_in, dtype))
        w = jax.random.uniform(kw, (fan_in, fan_out), dtype, -bound, bound)
        b = jax.random.uniform(kb, (1, fan_out), dtype, -bound, bound)
        params.append((w, b))
    return params


def ref_forward(x, params):
    """Pure-JAX reference (eval mode: dropout = identity)."""
    h = x
    for i, (w, b) in enumerate(params):
        h = h @ w + b
        if i < len(params) - 1:
            h = jnp.where(h > 0, h, jnp.expm1(h))
    return h


if __name__ == "__main__":
    # Small shapes consistent with the module: batch=8, in_dim=32, hidden=32, out=16, 3 layers.
    batch, in_dim, num_layers, h_dim, out_dim = 8, 32, 3, 32, 16

    key = jax.random.PRNGKey(0)
    key, kx, kp = jax.random.split(key, 3)
    x = jax.random.normal(kx, (batch, in_dim), jnp.float32)
    params = init_mlp_params(kp, in_dim, num_layers, h_dim, out_dim)
    ref = ref_forward(x, params)

    # f32 MXU-operand path: tight numerical check.
    y_f32 = fused_mlp(x, params, matmul_dtype=jnp.float32)
    jax.block_until_ready(y_f32)
    assert y_f32.shape == (batch, out_dim)
    assert jnp.allclose(y_f32, ref, atol=1e-5, rtol=1e-5)

    # Default bf16 MXU-operand path (bf16 weights + inter-layer activations, f32 accum):
    # error compounds slightly with depth vs the f32 reference -> loose tolerance.
    y_bf16 = fused_mlp(x, params)
    jax.block_until_ready(y_bf16)
    assert y_bf16.shape == (batch, out_dim)
    assert jnp.allclose(y_bf16, ref, atol=5e-2, rtol=5e-2)

    # Force the layer-streaming path (used automatically for large weight stacks on v7x).
    y_stream = fused_mlp(x, params, resident_weight_budget=0)
    jax.block_until_ready(y_stream)
    assert y_stream.shape == (batch, out_dim)
    assert jnp.allclose(y_stream, ref, atol=5e-2, rtol=5e-2)

    # Larger batch: exercises the >= 2-tile batch grid, batch padding and output slicing.
    key, kx2 = jax.random.split(key)
    xb = jax.random.normal(kx2, (40, in_dim), jnp.float32)
    refb = ref_forward(xb, params)
    yb = fused_mlp(xb, params)
    jax.block_until_ready(yb)
    assert yb.shape == (40, out_dim)
    assert jnp.allclose(yb, refb, atol=5e-2, rtol=5e-2)

    print("KERNEL_OK")
</pallas_src>

<mosaic_0001>
module attributes {stable_mosaic.version = 11 : i64} {
  func.func @_mlp_resident_kernel(%arg0: i32, %arg1: memref<8x128xf32, #tpu.memory_space<vmem>>, %arg2: memref<128x128xf32, #tpu.memory_space<vmem>>, %arg3: memref<1x128xf32, #tpu.memory_space<vmem>>, %arg4: memref<128x128xf32, #tpu.memory_space<vmem>>, %arg5: memref<1x128xf32, #tpu.memory_space<vmem>>, %arg6: memref<128x128xf32, #tpu.memory_space<vmem>>, %arg7: memref<1x128xf32, #tpu.memory_space<vmem>>, %arg8: memref<8x128xf32, #tpu.memory_space<vmem>>) attributes {dimension_semantics = [#tpu.dimension_semantics<parallel>], iteration_bounds = array<i64: 1>, scalar_prefetch = 0 : i64, scratch_operands = 0 : i64, tpu.core_type = #tpu.core_type<tc>, window_params = [{transform_indices = @transform_0, window_bounds = array<i64: 8, 128>}, {pipeline_mode = #tpu.pipeline_mode<synchronous>, transform_indices = @transform_1, window_bounds = array<i64: 128, 128>}, {pipeline_mode = #tpu.pipeline_mode<synchronous>, transform_indices = @transform_2, window_bounds = array<i64: 1, 128>}, {pipeline_mode = #tpu.pipeline_mode<synchronous>, transform_indices = @transform_3, window_bounds = array<i64: 128, 128>}, {pipeline_mode = #tpu.pipeline_mode<synchronous>, transform_indices = @transform_4, window_bounds = array<i64: 1, 128>}, {pipeline_mode = #tpu.pipeline_mode<synchronous>, transform_indices = @transform_5, window_bounds = array<i64: 128, 128>}, {pipeline_mode = #tpu.pipeline_mode<synchronous>, transform_indices = @transform_6, window_bounds = array<i64: 1, 128>}, {transform_indices = @transform_7, window_bounds = array<i64: 8, 128>}]} {
    %c0 = arith.constant 0 : index
    %c0_0 = arith.constant 0 : index
    %0 = vector.load %arg1[%c0, %c0_0] : memref<8x128xf32, #tpu.memory_space<vmem>>, vector<8x128xf32>
    %c0_1 = arith.constant 0 : index
    %c0_2 = arith.constant 0 : index
    %1 = vector.load %arg2[%c0_1, %c0_2] : memref<128x128xf32, #tpu.memory_space<vmem>>, vector<128x128xf32>
    %cst = arith.constant dense<0.000000e+00> : vector<8x128xf32>
    %2 = tpu.matmul %0, %1, %cst {dimension_numbers = #tpu.dot_dimension_numbers<[1], [0], [0], [1], [0, 0, 1, 1], [], []>} : vector<8x128xf32>, vector<128x128xf32>, vector<8x128xf32> -> vector<8x128xf32>
    %c0_3 = arith.constant 0 : index
    %c0_4 = arith.constant 0 : index
    %3 = vector.load %arg3[%c0_3, %c0_4] : memref<1x128xf32, #tpu.memory_space<vmem>>, vector<1x128xf32>
    %4 = vector.broadcast %3 : vector<1x128xf32> to vector<8x128xf32>
    %5 = arith.addf %2, %4 : vector<8x128xf32>
    %cst_5 = arith.constant 0.000000e+00 : f32
    %6 = vector.broadcast %cst_5 : f32 to vector<8x128xf32>
    %7 = arith.cmpf ogt, %5, %6 : vector<8x128xf32>
    %cst_6 = arith.constant 0.000000e+00 : f32
    %8 = vector.broadcast %cst_6 : f32 to vector<8x128xf32>
    %9 = arith.minimumf %5, %8 : vector<8x128xf32>
    %10 = math.exp %9 : vector<8x128xf32>
    %cst_7 = arith.constant 1.000000e+00 : f32
    %11 = vector.broadcast %cst_7 : f32 to vector<8x128xf32>
    %12 = arith.subf %10, %11 : vector<8x128xf32>
    %13 = arith.select %7, %5, %12 : vector<8x128xi1>, vector<8x128xf32>
    %c0_8 = arith.constant 0 : index
    %c0_9 = arith.constant 0 : index
    %14 = vector.load %arg4[%c0_8, %c0_9] : memref<128x128xf32, #tpu.memory_space<vmem>>, vector<128x128xf32>
    %cst_10 = arith.constant dense<0.000000e+00> : vector<8x128xf32>
    %15 = tpu.matmul %13, %14, %cst_10 {dimension_numbers = #tpu.dot_dimension_numbers<[1], [0], [0], [1], [0, 0, 1, 1], [], []>} : vector<8x128xf32>, vector<128x128xf32>, vector<8x128xf32> -> vector<8x128xf32>
    %c0_11 = arith.constant 0 : index
    %c0_12 = arith.constant 0 : index
    %16 = vector.load %arg5[%c0_11, %c0_12] : memref<1x128xf32, #tpu.memory_space<vmem>>, vector<1x128xf32>
    %17 = vector.broadcast %16 : vector<1x128xf32> to vector<8x128xf32>
    %18 = arith.addf %15, %17 : vector<8x128xf32>
    %cst_13 = arith.constant 0.000000e+00 : f32
    %19 = vector.broadcast %cst_13 : f32 to vector<8x128xf32>
    %20 = arith.cmpf ogt, %18, %19 : vector<8x128xf32>
    %cst_14 = arith.constant 0.000000e+00 : f32
    %21 = vector.broadcast %cst_14 : f32 to vector<8x128xf32>
    %22 = arith.minimumf %18, %21 : vector<8x128xf32>
    %23 = math.exp %22 : vector<8x128xf32>
    %cst_15 = arith.constant 1.000000e+00 : f32
    %24 = vector.broadcast %cst_15 : f32 to vector<8x128xf32>
    %25 = arith.subf %23, %24 : vector<8x128xf32>
    %26 = arith.select %20, %18, %25 : vector<8x128xi1>, vector<8x128xf32>
    %c0_16 = arith.constant 0 : index
    %c0_17 = arith.constant 0 : index
    %27 = vector.load %arg6[%c0_16, %c0_17] : memref<128x128xf32, #tpu.memory_space<vmem>>, vector<128x128xf32>
    %cst_18 = arith.constant dense<0.000000e+00> : vector<8x128xf32>
    %28 = tpu.matmul %26, %27, %cst_18 {dimension_numbers = #tpu.dot_dimension_numbers<[1], [0], [0], [1], [0, 0, 1, 1], [], []>} : vector<8x128xf32>, vector<128x128xf32>, vector<8x128xf32> -> vector<8x128xf32>
    %c0_19 = arith.constant 0 : index
    %c0_20 = arith.constant 0 : index
    %29 = vector.load %arg7[%c0_19, %c0_20] : memref<1x128xf32, #tpu.memory_space<vmem>>, vector<1x128xf32>
    %30 = vector.broadcast %29 : vector<1x128xf32> to vector<8x128xf32>
    %31 = arith.addf %28, %30 : vector<8x128xf32>
    %c0_21 = arith.constant 0 : index
    %c0_22 = arith.constant 0 : index
    %32 = vector.load %arg8[%c0_21, %c0_22] : memref<8x128xf32, #tpu.memory_space<vmem>>, vector<8x128xf32>
    tpu.vector_store %arg8[%c0_21, %c0_22], %31 {strides = array<i32>} : memref<8x128xf32, #tpu.memory_space<vmem>>, vector<8x128xf32>,
    return
  }
  func.func @transform_0(%arg0: i32) -> (i32, i32) {
    %c0_i32 = arith.constant 0 : i32
    %c0_i32_0 = arith.constant 0 : i32
    return %arg0, %c0_i32 : i32, i32
  }
  func.func @transform_1(%arg0: i32) -> (i32, i32) {
    %c0_i32 = arith.constant 0 : i32
    %c0_i32_0 = arith.constant 0 : i32
    %c0_i32_1 = arith.constant 0 : i32
    return %c0_i32, %c0_i32_0 : i32, i32
  }
  func.func @transform_2(%arg0: i32) -> (i32, i32) {
    %c0_i32 = arith.constant 0 : i32
    %c0_i32_0 = arith.constant 0 : i32
    %c0_i32_1 = arith.constant 0 : i32
    return %c0_i32, %c0_i32_0 : i32, i32
  }
  func.func @transform_3(%arg0: i32) -> (i32, i32) {
    %c0_i32 = arith.constant 0 : i32
    %c0_i32_0 = arith.constant 0 : i32
    %c0_i32_1 = arith.constant 0 : i32
    return %c0_i32, %c0_i32_0 : i32, i32
  }
  func.func @transform_4(%arg0: i32) -> (i32, i32) {
    %c0_i32 = arith.constant 0 : i32
    %c0_i32_0 = arith.constant 0 : i32
    %c0_i32_1 = arith.constant 0 : i32
    return %c0_i32, %c0_i32_0 : i32, i32
  }
  func.func @transform_5(%arg0: i32) -> (i32, i32) {
    %c0_i32 = arith.constant 0 : i32
    %c0_i32_0 = arith.constant 0 : i32
    %c0_i32_1 = arith.constant 0 : i32
    return %c0_i32, %c0_i32_0 : i32, i32
  }
  func.func @transform_6(%arg0: i32) -> (i32, i32) {
    %c0_i32 = arith.constant 0 : i32
    %c0_i32_0 = arith.constant 0 : i32
    %c0_i32_1 = arith.constant 0 : i32
    return %c0_i32, %c0_i32_0 : i32, i32
  }
  func.func @transform_7(%arg0: i32) -> (i32, i32) {
    %c0_i32 = arith.constant 0 : i32
    %c0_i32_0 = arith.constant 0 : i32
    return %arg0, %c0_i32 : i32, i32
  }
}

module attributes {stable_mosaic.version = 11 : i64} {
  func.func @_mlp_resident_kernel(%arg0: i32, %arg1: memref<8x128xf32, #tpu.memory_space<vmem>>, %arg2: memref<128x128xf32, #tpu.memory_space<vmem>>, %arg3: memref<1x128xf32, #tpu.memory_space<vmem>>, %arg4: memref<128x128xf32, #tpu.memory_space<vmem>>, %arg5: memref<1x128xf32, #tpu.memory_space<vmem>>, %arg6: memref<128x128xf32, #tpu.memory_space<vmem>>, %arg7: memref<1x128xf32, #tpu.memory_space<vmem>>, %arg8: memref<8x128xf32, #tpu.memory_space<vmem>>) attributes {dimension_semantics = [#tpu.dimension_semantics<parallel>], iteration_bounds = array<i64: 1>, scalar_prefetch = 0 : i64, scratch_operands = 0 : i64, tpu.core_type = #tpu.core_type<tc>, window_params = [{transform_indices = @transform_0, window_bounds = array<i64: 8, 128>}, {pipeline_mode = #tpu.pipeline_mode<synchronous>, transform_indices = @transform_1, window_bounds = array<i64: 128, 128>}, {pipeline_mode = #tpu.pipeline_mode<synchronous>, transform_indices = @transform_2, window_bounds = array<i64: 1, 128>}, {pipeline_mode = #tpu.pipeline_mode<synchronous>, transform_indices = @transform_3, window_bounds = array<i64: 128, 128>}, {pipeline_mode = #tpu.pipeline_mode<synchronous>, transform_indices = @transform_4, window_bounds = array<i64: 1, 128>}, {pipeline_mode = #tpu.pipeline_mode<synchronous>, transform_indices = @transform_5, window_bounds = array<i64: 128, 128>}, {pipeline_mode = #tpu.pipeline_mode<synchronous>, transform_indices = @transform_6, window_bounds = array<i64: 1, 128>}, {transform_indices = @transform_7, window_bounds = array<i64: 8, 128>}]} {
    %c0 = arith.constant 0 : index
    %c0_0 = arith.constant 0 : index
    %0 = vector.load %arg1[%c0, %c0_0] : memref<8x128xf32, #tpu.memory_space<vmem>>, vector<8x128xf32>
    %c0_1 = arith.constant 0 : index
    %c0_2 = arith.constant 0 : index
    %1 = vector.load %arg2[%c0_1, %c0_2] : memref<128x128xf32, #tpu.memory_space<vmem>>, vector<128x128xf32>
    %cst = arith.constant dense<0.000000e+00> : vector<8x128xf32>
    %2 = tpu.matmul %0, %1, %cst {dimension_numbers = #tpu.dot_dimension_numbers<[1], [0], [0], [1], [0, 0, 1, 1], [], []>} : vector<8x128xf32>, vector<128x128xf32>, vector<8x128xf32> -> vector<8x128xf32>
    %c0_3 = arith.constant 0 : index
    %c0_4 = arith.constant 0 : index
    %3 = vector.load %arg3[%c0_3, %c0_4] : memref<1x128xf32, #tpu.memory_space<vmem>>, vector<1x128xf32>
    %4 = vector.broadcast %3 : vector<1x128xf32> to vector<8x128xf32>
    %5 = arith.addf %2, %4 : vector<8x128xf32>
    %cst_5 = arith.constant 0.000000e+00 : f32
    %6 = vector.broadcast %cst_5 : f32 to vector<8x128xf32>
    %7 = arith.cmpf ogt, %5, %6 : vector<8x128xf32>
    %cst_6 = arith.constant 0.000000e+00 : f32
    %8 = vector.broadcast %cst_6 : f32 to vector<8x128xf32>
    %9 = arith.minimumf %5, %8 : vector<8x128xf32>
    %10 = math.exp %9 : vector<8x128xf32>
    %cst_7 = arith.constant 1.000000e+00 : f32
    %11 = vector.broadcast %cst_7 : f32 to vector<8x128xf32>
    %12 = arith.subf %10, %11 : vector<8x128xf32>
    %13 = arith.select %7, %5, %12 : vector<8x128xi1>, vector<8x128xf32>
    %c0_8 = arith.constant 0 : index
    %c0_9 = arith.constant 0 : index
    %14 = vector.load %arg4[%c0_8, %c0_9] : memref<128x128xf32, #tpu.memory_space<vmem>>, vector<128x128xf32>
    %cst_10 = arith.constant dense<0.000000e+00> : vector<8x128xf32>
    %15 = tpu.matmul %13, %14, %cst_10 {dimension_numbers = #tpu.dot_dimension_numbers<[1], [0], [0], [1], [0, 0, 1, 1], [], []>} : vector<8x128xf32>, vector<128x128xf32>, vector<8x128xf32> -> vector<8x128xf32>
    %c0_11 = arith.constant 0 : index
    %c0_12 = arith.constant 0 : index
    %16 = vector.load %arg5[%c0_11, %c0_12] : memref<1x128xf32, #tpu.memory_space<vmem>>, vector<1x128xf32>
    %17 = vector.broadcast %16 : vector<1x128xf32> to vector<8x128xf32>
    %18 = arith.addf %15, %17 : vector<8x128xf32>
    %cst_13 = arith.constant 0.000000e+00 : f32
    %19 = vector.broadcast %cst_13 : f32 to vector<8x128xf32>
    %20 = arith.cmpf ogt, %18, %19 : vector<8x128xf32>
    %cst_14 = arith.constant 0.000000e+00 : f32
    %21 = vector.broadcast %cst_14 : f32 to vector<8x128xf32>
    %22 = arith.minimumf %18, %21 : vector<8x128xf32>
    %23 = math.exp %22 : vector<8x128xf32>
    %cst_15 = arith.constant 1.000000e+00 : f32
    %24 = vector.broadcast %cst_15 : f32 to vector<8x128xf32>
    %25 = arith.subf %23, %24 : vector<8x128xf32>
    %26 = arith.select %20, %18, %25 : vector<8x128xi1>, vector<8x128xf32>
    %c0_16 = arith.constant 0 : index
    %c0_17 = arith.constant 0 : index
    %27 = vector.load %arg6[%c0_16, %c0_17] : memref<128x128xf32, #tpu.memory_space<vmem>>, vector<128x128xf32>
    %cst_18 = arith.constant dense<0.000000e+00> : vector<8x128xf32>
    %28 = tpu.matmul %26, %27, %cst_18 {dimension_numbers = #tpu.dot_dimension_numbers<[1], [0], [0], [1], [0, 0, 1, 1], [], []>} : vector<8x128xf32>, vector<128x128xf32>, vector<8x128xf32> -> vector<8x128xf32>
    %c0_19 = arith.constant 0 : index
    %c0_20 = arith.constant 0 : index
    %29 = vector.load %arg7[%c0_19, %c0_20] : memref<1x128xf32, #tpu.memory_space<vmem>>, vector<1x128xf32>
    %30 = vector.broadcast %29 : vector<1x128xf32> to vector<8x128xf32>
    %31 = arith.addf %28, %30 : vector<8x128xf32>
    %c0_21 = arith.constant 0 : index
    %c0_22 = arith.constant 0 : index
    %32 = vector.load %arg8[%c0_21, %c0_22] : memref<8x128xf32, #tpu.memory_space<vmem>>, vector<8x128xf32>
    tpu.vector_store %arg8[%c0_21, %c0_22], %31 {strides = array<i32>} : memref<8x128xf32, #tpu.memory_space<vmem>>, vector<8x128xf32>,
    return
  }
  func.func @transform_0(%arg0: i32) -> (i32, i32) {
    %c0_i32 = arith.constant 0 : i32
    %c0_i32_0 = arith.constant 0 : i32
    return %arg0, %c0_i32 : i32, i32
  }
  func.func @transform_1(%arg0: i32) -> (i32, i32) {
    %c0_i32 = arith.constant 0 : i32
    %c0_i32_0 = arith.constant 0 : i32
    %c0_i32_1 = arith.constant 0 : i32
    return %c0_i32, %c0_i32_0 : i32, i32
  }
  func.func @transform_2(%arg0: i32) -> (i32, i32) {
    %c0_i32 = arith.constant 0 : i32
    %c0_i32_0 = arith.constant 0 : i32
    %c0_i32_1 = arith.constant 0 : i32
    return %c0_i32, %c0_i32_0 : i32, i32
  }
  func.func @transform_3(%arg0: i32) -> (i32, i32) {
    %c0_i32 = arith.constant 0 : i32
    %c0_i32_0 = arith.constant 0 : i32
    %c0_i32_1 = arith.constant 0 : i32
    return %c0_i32, %c0_i32_0 : i32, i32
  }
  func.func @transform_4(%arg0: i32) -> (i32, i32) {
    %c0_i32 = arith.constant 0 : i32
    %c0_i32_0 = arith.constant 0 : i32
    %c0_i32_1 = arith.constant 0 : i32
    return %c0_i32, %c0_i32_0 : i32, i32
  }
  func.func @transform_5(%arg0: i32) -> (i32, i32) {
    %c0_i32 = arith.constant 0 : i32
    %c0_i32_0 = arith.constant 0 : i32
    %c0_i32_1 = arith.constant 0 : i32
    return %c0_i32, %c0_i32_0 : i32, i32
  }
  func.func @transform_6(%arg0: i32) -> (i32, i32) {
    %c0_i32 = arith.constant 0 : i32
    %c0_i32_0 = arith.constant 0 : i32
    %c0_i32_1 = arith.constant 0 : i32
    return %c0_i32, %c0_i32_0 : i32, i32
  }
  func.func @transform_7(%arg0: i32) -> (i32, i32) {
    %c0_i32 = arith.constant 0 : i32
    %c0_i32_0 = arith.constant 0 : i32
    return %arg0, %c0_i32 : i32, i32
  }
}

</mosaic_0001>

<bundles_post_ra>
// kernel: tpu_custom_call.1
= control target key start
LH: loop header
LB: loop body
LE: loop exit
PB: predicated region body
PF: predicated region fallthrough
CT: control target
= control target key end

     0   :  { %12 = vsyncpa [#allocation3], 0  ;;  %s456_s0 = inlined_call_operand.hbm [shape: f32[8,128], index: 0, kind: input, shape index: {}]   ;;  %s457_s1 = inlined_call_operand.hbm [shape: f32[128,128], index: 1, kind: input, shape index: {}]   ;;  %s458_s2 = inlined_call_operand.vmem [shape: f32[1,128], index: 2, kind: input, shape index: {}]   ;;  %s459_s3 = inlined_call_operand.hbm [shape: f32[128,128], index: 3, kind: input, shape index: {}]   ;;  %s460_s4 = inlined_call_operand.vmem [shape: f32[1,128], index: 4, kind: input, shape index: {}]   ;;  %s461_s5 = inlined_call_operand.hbm [shape: f32[128,128], index: 5, kind: input, shape index: {}]   ;;  %s462_s6 = inlined_call_operand.vmem [shape: f32[1,128], index: 6, kind: input, shape index: {}]   ;;  %s463_s7 = inlined_call_operand.hbm [shape: f32[8,128], index: 7, kind: output, shape index: {}]  }
   0x1   :  { %13 = vsyncpa [#allocation6], 0 }
   0x2   :  { %14 = vsyncpa [#allocation9], 0  ;;  %s31_s26 = sshll.u32 %s457_s1, 4  ;;  %s32_s26 = int_to_ptr.hbm [resolvable:$true] %s31_s26 }
   0x3   :  { %15 = vsyncpa [#allocation4], 0  ;;  %s385_s27 = smov [#allocation5]   ;;  %s21_s8 = sshll.u32 %s456_s0, 4  ;;  %s22_s8 = int_to_ptr.hbm [resolvable:$true] %s21_s8 }
   0x4   :  { %s33_s28 = sshll.u32 %s385_s27, 4  ;;  %s386_s9 = smov 128   ;;  %s34_s28 = int_to_ptr.vmem [resolvable:$true] %s33_s28 }
   0x5   :  { %s387_s10 = smov 8   ;;  %s388_s11 = smov [#allocation2]  }
   0x6   :  { %39 = dma.hbm_to_vmem [thread:$0]  %s32_s26, 2048, %s34_s28, [#allocation6], %s386_s9, %s386_s9, %s387_s10  }
   0x7   :  { %s23_s12 = sshll.u32 %s388_s11, 4  ;;  %s46_s15 = sshll.u32 %s459_s3, 4  ;;  %s24_s12 = int_to_ptr.vmem [resolvable:$true] %s23_s12  ;;  %s47_s15 = int_to_ptr.hbm [resolvable:$true] %s46_s15 }
   0x8   :  { %26 = dma.hbm_to_vmem [thread:$0]  %s22_s8, 128, %s24_s12, [#allocation3]  }
   0x9   :  { %s61_s17 = sshll.u32 %s461_s5, 4  ;;  %s389_s18 = smov [#allocation7]   ;;  %s62_s17 = int_to_ptr.hbm [resolvable:$true] %s61_s17 }
   0xa   :  { %s48_s19 = sshll.u32 %s389_s18, 4  ;;  %s390_s0 = smov [#allocation8]   ;;  %s49_s19 = int_to_ptr.vmem [resolvable:$true] %s48_s19 }
   0xb   :  { %54 = dma.hbm_to_vmem [thread:$0]  %s47_s15, 2048, %s49_s19, [#allocation6], %s386_s9, %s386_s9, %s387_s10  }
   0xc   :  { %s63_s20 = sshll.u32 %s390_s0, 4  ;;  %s64_s20 = int_to_ptr.vmem [resolvable:$true] %s63_s20 }
   0xd   :  { %69 = dma.hbm_to_vmem [thread:$0]  %s62_s17, 2048, %s64_s20, [#allocation9], %s386_s9, %s386_s9, %s387_s10  }
   0xe   :  { %377 = dma.done.wait [#allocation3], 128  }
   0xf   :  { %378 = vsyncadd [#allocation3], 4294967168 }
  0x10   :  { %379 = dma.done.wait [#allocation6], 4096  }
  0x11   :  { %380 = vsyncadd [#allocation6], 4294963200 }
  0x12   :  { %381 = dma.done.wait [#allocation9], 2048  }
  0x13   :  { %382 = vsyncadd [#allocation9], 4294965248  ;;  %v104_v0 = vld [vmem:[#allocation5 + $0x78] sm:$0xff]  ;;  %v103_v1 = vld [vmem:[#allocation5 + $0x70] sm:$0xff]  ;;  %s391_s24 = smov [#allocation10]  }
  0x14   :  { %109 = vmatpush.msra.mxu0 %v104_v0  ;;  %v102_v2 = vld [vmem:[#allocation5 + $0x68] sm:$0xff]  ;;  %v101_v3 = vld [vmem:[#allocation5 + $0x60] sm:$0xff]  ;;  %v150_v4 = vld [vmem:[#allocation7 + $0x78] sm:$0xff]  ;;  %s227_s25 = sshll.u32 %s391_s24, 4  ;;  %s228_s25 = int_to_ptr.vmem [resolvable:$true] %s227_s25 }
  0x15   :  { %v100_v5 = vld [vmem:[#allocation5 + $0x58] sm:$0xff]  ;;  %155 = vmatpush.msra.mxu1 %v150_v4  ;;  %v149_v6 = vld [vmem:[#allocation7 + $0x70] sm:$0xff]  ;;  %v148_v7 = vld [vmem:[#allocation7 + $0x68] sm:$0xff] }
  0x16   :  { %110 = vmatpush.msra.mxu0 %v103_v1  ;;  %v99_v8 = vld [vmem:[#allocation5 + $0x50] sm:$0xff]  ;;  %v147_v9 = vld [vmem:[#allocation7 + $0x60] sm:$0xff]  ;;  %v98_v10 = vld [vmem:[#allocation5 + $0x48] sm:$0xff] }
  0x17   :  { %156 = vmatpush.msra.mxu1 %v149_v6  ;;  %v146_v11 = vld [vmem:[#allocation7 + $0x58] sm:$0xff]  ;;  %v97_v12 = vld [vmem:[#allocation5 + $0x40] sm:$0xff]  ;;  %v145_v13 = vld [vmem:[#allocation7 + $0x50] sm:$0xff] }
  0x18   :  { %111 = vmatpush.msra.mxu0 %v102_v2  ;;  %v96_v14 = vld [vmem:[#allocation5 + $0x38] sm:$0xff]  ;;  %v144_v15 = vld [vmem:[#allocation7 + $0x48] sm:$0xff]  ;;  %v95_v16 = vld [vmem:[#allocation5 + $0x30] sm:$0xff] }
  0x19   :  { %157 = vmatpush.msra.mxu1 %v148_v7  ;;  %v94_v17 = vld [vmem:[#allocation5 + $0x28] sm:$0xff]  ;;  %v93_v18 = vld [vmem:[#allocation5 + $0x20] sm:$0xff]  ;;  %v92_v19 = vld [vmem:[#allocation5 + $0x18] sm:$0xff] }
  0x1a   :  { %112 = vmatpush.msra.mxu0 %v101_v3  ;;  %v91_v20 = vld [vmem:[#allocation5 + $0x10] sm:$0xff]  ;;  %v90_v21 = vld [vmem:[#allocation5 + $0x8] sm:$0xff]  ;;  %v89_v22 = vld [vmem:[#allocation5] sm:$0xff] }
  0x1b   :  { %158 = vmatpush.msra.mxu1 %v147_v9  ;;  %v88_v23 = vld [vmem:[#allocation2] sm:$0xff]  ;;  %v143_v24 = vld [vmem:[#allocation7 + $0x40] sm:$0xff]  ;;  %v141_v26 = vld [vmem:[#allocation7 + $0x30] sm:$0xff] }
  0x1c   :  { %113 = vmatpush.msra.mxu0 %v100_v5  ;;  %v142_v25 = vld [vmem:[#allocation7 + $0x38] sm:$0xff]  ;;  %v140_v27 = vld [vmem:[#allocation7 + $0x28] sm:$0xff]  ;;  %v139_v28 = vld [vmem:[#allocation7 + $0x20] sm:$0xff] }
  0x1d   :  { %159 = vmatpush.msra.mxu1 %v146_v11  ;;  %v138_v29 = vld [vmem:[#allocation7 + $0x18] sm:$0xff]  ;;  %v137_v30 = vld [vmem:[#allocation7 + $0x10] sm:$0xff]  ;;  %v136_v31 = vld [vmem:[#allocation7 + $0x8] sm:$0xff] }
  0x1e   :  { %114 = vmatpush.msra.mxu0 %v99_v8  ;;  %v135_v32 = vld [vmem:[#allocation7] sm:$0xff]  ;;  %v196_v33 = vld [vmem:[#allocation8 + $0x78] sm:$0xff]  ;;  %v195_v34 = vld [vmem:[#allocation8 + $0x70] sm:$0xff] }
  0x1f   :  { %160 = vmatpush.msra.mxu1 %v145_v13  ;;  %201 = vmatpush.msra.mxu2 %v196_v33  ;;  %v194_v35 = vld [vmem:[#allocation8 + $0x68] sm:$0xff]  ;;  %v193_v36 = vld [vmem:[#allocation8 + $0x60] sm:$0xff]  ;;  %v192_v37 = vld [vmem:[#allocation8 + $0x58] sm:$0xff] }
  0x20   :  { %115 = vmatpush.msra.mxu0 %v98_v10  ;;  %v191_v38 = vld [vmem:[#allocation8 + $0x50] sm:$0xff]  ;;  %v190_v39 = vld [vmem:[#allocation8 + $0x48] sm:$0xff]  ;;  %v250_v40 = vld [vmem:[%s458_s2] ss:$0 sm:$0xff] }
  0x21   :  { %161 = vmatpush.msra.mxu1 %v144_v15  ;;  %202 = vmatpush.msra.mxu2 %v195_v34  ;;  %v189_v48 = vld [vmem:[#allocation8 + $0x40] sm:$0xff]  ;;  %v188_v49 = vld [vmem:[#allocation8 + $0x38] sm:$0xff]  ;;  %v187_v50 = vld [vmem:[#allocation8 + $0x30] sm:$0xff] }
  0x22   :  { %116 = vmatpush.msra.mxu0 %v97_v12  ;;  %v186_v51 = vld [vmem:[#allocation8 + $0x28] sm:$0xff]  ;;  %v185_v52 = vld [vmem:[#allocation8 + $0x20] sm:$0xff]  ;;  %v184_v53 = vld [vmem:[#allocation8 + $0x18] sm:$0xff] }
  0x23   :  { %162 = vmatpush.msra.mxu1 %v143_v24  ;;  %203 = vmatpush.msra.mxu2 %v194_v35  ;;  %v183_v54 = vld [vmem:[#allocation8 + $0x10] sm:$0xff]  ;;  %v182_v55 = vld [vmem:[#allocation8 + $0x8] sm:$0xff]  ;;  %v181_v56 = vld [vmem:[#allocation8] sm:$0xff] }
  0x24   :  { %117 = vmatpush.msra.mxu0 %v96_v14  ;;  %v251_v57 = vld [vmem:[%s460_s4] ss:$0 sm:$0xff]  ;;  %s229_s4 = sshll.u32 %s463_s7, 4  ;;  %s230_s4 = int_to_ptr.hbm [resolvable:$true] %s229_s4 }
  0x25   :  { %163 = vmatpush.msra.mxu1 %v142_v25  ;;  %204 = vmatpush.msra.mxu2 %v193_v36  ;;  %v252_v1 = vld [vmem:[%s462_s6] ss:$0 sm:$0xff] }
  0x26   :  { %118 = vmatpush.msra.mxu0 %v95_v16 }
  0x27   :  { %164 = vmatpush.msra.mxu1 %v141_v26  ;;  %205 = vmatpush.msra.mxu2 %v192_v37 }
  0x28   :  { %119 = vmatpush.msra.mxu0 %v94_v17 }
  0x29   :  { %165 = vmatpush.msra.mxu1 %v140_v27  ;;  %206 = vmatpush.msra.mxu2 %v191_v38 }
  0x2a   :  { %120 = vmatpush.msra.mxu0 %v93_v18 }
  0x2b   :  { %166 = vmatpush.msra.mxu1 %v139_v28  ;;  %207 = vmatpush.msra.mxu2 %v190_v39 }
  0x2c   :  { %121 = vmatpush.msra.mxu0 %v92_v19 }
  0x2d   :  { %167 = vmatpush.msra.mxu1 %v138_v29  ;;  %208 = vmatpush.msra.mxu2 %v189_v48 }
  0x2e   :  { %122 = vmatpush.msra.mxu0 %v91_v20 }
  0x2f   :  { %168 = vmatpush.msra.mxu1 %v137_v30  ;;  %209 = vmatpush.msra.mxu2 %v188_v49 }
  0x30   :  { %123 = vmatpush.msra.mxu0 %v90_v21 }
  0x31   :  { %169 = vmatpush.msra.mxu1 %v136_v31  ;;  %210 = vmatpush.msra.mxu2 %v187_v50 }
  0x32   :  { %124 = vmatpush.msra.mxu0 %v89_v22 }
  0x33   :  { %125 = vmatmul.f32.vlgmr.msra.gmra.mxu0 %v88_v23  ;;  %170 = vmatpush.msra.mxu1 %v135_v32 }
  0x34   :  { %211 = vmatpush.msra.mxu2 %v186_v51 }
  0x36   :  { %212 = vmatpush.msra.mxu2 %v185_v52 }
  0x38   :  { %213 = vmatpush.msra.mxu2 %v184_v53 }
  0x3a   :  { %214 = vmatpush.msra.mxu2 %v183_v54 }
  0x3c   :  { %215 = vmatpush.msra.mxu2 %v182_v55 }
  0x3e   :  { %216 = vmatpush.msra.mxu2 %v181_v56 }
  0xb0   :  { %v126_v41 = vpop.f32.mrf.mxu0 }
  0xb1   :  { %v127_v42 = vadd.f32 %v250_v40, %v126_v41 }
  0xb3   :  { %v130_v43 = vmin.f32 %v127_v42, 0.0  ;;  %vm129_vm0 = vcmp.gt.f32.partialorder %v127_v42, 0.0 }
  0xb5   :  { %v131_v44 = vmul.f32 1.442695, %v130_v43 }
  0xb7   :  { %253 = vpow2.f32 %v131_v44 }
  0xbd   :  { %v254_v45 = vpop.eup %253 }
  0xbe   :  { %v241_v46 = vadd.f32 -1.0, %v254_v45 }
  0xc0   :  { %v134_v47 = vsel %vm129_vm0, %v127_v42, %v241_v46 }
  0xc1   :  { %171 = vmatmul.f32.vlgmr.msra.gmra.mxu1 %v134_v47 }
 0x13e   :  { %v172_v58 = vpop.f32.mrf.mxu1 }
 0x13f   :  { %v173_v59 = vadd.f32 %v251_v57, %v172_v58 }
 0x141   :  { %v176_v60 = vmin.f32 %v173_v59, 0.0  ;;  %vm175_vm1 = vcmp.gt.f32.partialorder %v173_v59, 0.0 }
 0x143   :  { %v177_v61 = vmul.f32 1.442695, %v176_v60 }
 0x145   :  { %255 = vpow2.f32 %v177_v61 }
 0x14b   :  { %v256_v62 = vpop.eup %255 }
 0x14c   :  { %v242_v63 = vadd.f32 -1.0, %v256_v62 }
 0x14e   :  { %v180_v0 = vsel %vm175_vm1, %v173_v59, %v242_v63 }
 0x14f   :  { %217 = vmatmul.f32.vlgmr.msra.gmra.mxu2 %v180_v0 }
 0x1d2   :  { %v218_v2 = vpop.f32.mrf.mxu2 }
 0x1d3   :  { %v219_v3 = vadd.f32 %v252_v1, %v218_v2 }
 0x1d5   :  { %221 = vst [vmem:[#allocation10] sm:$0xff] %v219_v3 }
 0x1d6   :  { %232 = dma.vmem_to_hbm [thread:$0]  %s228_s25, 128, %s230_s4, [#allocation4]  }
 0x1d7   :  { %383 = dma.done.wait [#allocation4], 128  }
 0x1d8   :  { %384 = vsyncadd [#allocation4], 4294967168 }
 0x1d9   :  { %237 = vsyncpa [#allocation3], 1 }
 0x1da   :  { %238 = vsyncpa [#allocation6], 1 }
 0x1db   :  { %239 = vsyncpa [#allocation9], 1 }
 0x1dc   :  { %240 = vsyncpa [#allocation4], 1 }

// kernel: tpu_custom_call.1
= control target key start
LH: loop header
LB: loop body
LE: loop exit
PB: predicated region body
PF: predicated region fallthrough
CT: control target
= control target key end

     0   :  { %12 = vsyncpa [#allocation3], 0  ;;  %s456_s0 = inlined_call_operand.hbm [shape: f32[8,128], index: 0, kind: input, shape index: {}]   ;;  %s457_s1 = inlined_call_operand.hbm [shape: f32[128,128], index: 1, kind: input, shape index: {}]   ;;  %s458_s2 = inlined_call_operand.vmem [shape: f32[1,128], index: 2, kind: input, shape index: {}]   ;;  %s459_s3 = inlined_call_operand.hbm [shape: f32[128,128], index: 3, kind: input, shape index: {}]   ;;  %s460_s4 = inlined_call_operand.vmem [shape: f32[1,128], index: 4, kind: input, shape index: {}]   ;;  %s461_s5 = inlined_call_operand.hbm [shape: f32[128,128], index: 5, kind: input, shape index: {}]   ;;  %s462_s6 = inlined_call_operand.vmem [shape: f32[1,128], index: 6, kind: input, shape index: {}]   ;;  %s463_s7 = inlined_call_operand.hbm [shape: f32[8,128], index: 7, kind: output, shape index: {}]  }
   0x1   :  { %13 = vsyncpa [#allocation6], 0 }
   0x2   :  { %14 = vsyncpa [#allocation9], 0  ;;  %s31_s26 = sshll.u32 %s457_s1, 4  ;;  %s32_s26 = int_to_ptr.hbm [resolvable:$true] %s31_s26 }
   0x3   :  { %15 = vsyncpa [#allocation4], 0  ;;  %s385_s27 = smov [#allocation5]   ;;  %s21_s8 = sshll.u32 %s456_s0, 4  ;;  %s22_s8 = int_to_ptr.hbm [resolvable:$true] %s21_s8 }
   0x4   :  { %s33_s28 = sshll.u32 %s385_s27, 4  ;;  %s386_s9 = smov 128   ;;  %s34_s28 = int_to_ptr.vmem [resolvable:$true] %s33_s28 }
   0x5   :  { %s387_s10 = smov 8   ;;  %s388_s11 = smov [#allocation2]  }
   0x6   :  { %39 = dma.hbm_to_vmem [thread:$0]  %s32_s26, 2048, %s34_s28, [#allocation6], %s386_s9, %s386_s9, %s387_s10  }
   0x7   :  { %s23_s12 = sshll.u32 %s388_s11, 4  ;;  %s46_s15 = sshll.u32 %s459_s3, 4  ;;  %s24_s12 = int_to_ptr.vmem [resolvable:$true] %s23_s12  ;;  %s47_s15 = int_to_ptr.hbm [resolvable:$true] %s46_s15 }
   0x8   :  { %26 = dma.hbm_to_vmem [thread:$0]  %s22_s8, 128, %s24_s12, [#allocation3]  }
   0x9   :  { %s61_s17 = sshll.u32 %s461_s5, 4  ;;  %s389_s18 = smov [#allocation7]   ;;  %s62_s17 = int_to_ptr.hbm [resolvable:$true] %s61_s17 }
   0xa   :  { %s48_s19 = sshll.u32 %s389_s18, 4  ;;  %s390_s0 = smov [#allocation8]   ;;  %s49_s19 = int_to_ptr.vmem [resolvable:$true] %s48_s19 }
   0xb   :  { %54 = dma.hbm_to_vmem [thread:$0]  %s47_s15, 2048, %s49_s19, [#allocation6], %s386_s9, %s386_s9, %s387_s10  }
   0xc   :  { %s63_s20 = sshll.u32 %s390_s0, 4  ;;  %s64_s20 = int_to_ptr.vmem [resolvable:$true] %s63_s20 }
   0xd   :  { %69 = dma.hbm_to_vmem [thread:$0]  %s62_s17, 2048, %s64_s20, [#allocation9], %s386_s9, %s386_s9, %s387_s10  }
   0xe   :  { %377 = dma.done.wait [#allocation3], 128  }
   0xf   :  { %378 = vsyncadd [#allocation3], 4294967168 }
  0x10   :  { %379 = dma.done.wait [#allocation6], 4096  }
  0x11   :  { %380 = vsyncadd [#allocation6], 4294963200 }
  0x12   :  { %381 = dma.done.wait [#allocation9], 2048  }
  0x13   :  { %382 = vsyncadd [#allocation9], 4294965248  ;;  %v104_v0 = vld [vmem:[#allocation5 + $0x78] sm:$0xff]  ;;  %v103_v1 = vld [vmem:[#allocation5 + $0x70] sm:$0xff]  ;;  %s391_s24 = smov [#allocation10]  }
  0x14   :  { %109 = vmatpush.msra.mxu0 %v104_v0  ;;  %v102_v2 = vld [vmem:[#allocation5 + $0x68] sm:$0xff]  ;;  %v101_v3 = vld [vmem:[#allocation5 + $0x60] sm:$0xff]  ;;  %v150_v4 = vld [vmem:[#allocation7 + $0x78] sm:$0xff]  ;;  %s227_s25 = sshll.u32 %s391_s24, 4  ;;  %s228_s25 = int_to_ptr.vmem [resolvable:$true] %s227_s25 }
  0x15   :  { %v100_v5 = vld [vmem:[#allocation5 + $0x58] sm:$0xff]  ;;  %155 = vmatpush.msra.mxu1 %v150_v4  ;;  %v149_v6 = vld [vmem:[#allocation7 + $0x70] sm:$0xff]  ;;  %v148_v7 = vld [vmem:[#allocation7 + $0x68] sm:$0xff] }
  0x16   :  { %110 = vmatpush.msra.mxu0 %v103_v1  ;;  %v99_v8 = vld [vmem:[#allocation5 + $0x50] sm:$0xff]  ;;  %v147_v9 = vld [vmem:[#allocation7 + $0x60] sm:$0xff]  ;;  %v98_v10 = vld [vmem:[#allocation5 + $0x48] sm:$0xff] }
  0x17   :  { %156 = vmatpush.msra.mxu1 %v149_v6  ;;  %v146_v11 = vld [vmem:[#allocation7 + $0x58] sm:$0xff]  ;;  %v97_v12 = vld [vmem:[#allocation5 + $0x40] sm:$0xff]  ;;  %v145_v13 = vld [vmem:[#allocation7 + $0x50] sm:$0xff] }
  0x18   :  { %111 = vmatpush.msra.mxu0 %v102_v2  ;;  %v96_v14 = vld [vmem:[#allocation5 + $0x38] sm:$0xff]  ;;  %v144_v15 = vld [vmem:[#allocation7 + $0x48] sm:$0xff]  ;;  %v95_v16 = vld [vmem:[#allocation5 + $0x30] sm:$0xff] }
  0x19   :  { %157 = vmatpush.msra.mxu1 %v148_v7  ;;  %v94_v17 = vld [vmem:[#allocation5 + $0x28] sm:$0xff]  ;;  %v93_v18 = vld [vmem:[#allocation5 + $0x20] sm:$0xff]  ;;  %v92_v19 = vld [vmem:[#allocation5 + $0x18] sm:$0xff] }
  0x1a   :  { %112 = vmatpush.msra.mxu0 %v101_v3  ;;  %v91_v20 = vld [vmem:[#allocation5 + $0x10] sm:$0xff]  ;;  %v90_v21 = vld [vmem:[#allocation5 + $0x8] sm:$0xff]  ;;  %v89_v22 = vld [vmem:[#allocation5] sm:$0xff] }
  0x1b   :  { %158 = vmatpush.msra.mxu1 %v147_v9  ;;  %v88_v23 = vld [vmem:[#allocation2] sm:$0xff]  ;;  %v143_v24 = vld [vmem:[#allocation7 + $0x40] sm:$0xff]  ;;  %v141_v26 = vld [vmem:[#allocation7 + $0x30] sm:$0xff] }
  0x1c   :  { %113 = vmatpush.msra.mxu0 %v100_v5  ;;  %v142_v25 = vld [vmem:[#allocation7 + $0x38] sm:$0xff]  ;;  %v140_v27 = vld [vmem:[#allocation7 + $0x28] sm:$0xff]  ;;  %v139_v28 = vld [vmem:[#allocation7 + $0x20] sm:$0xff] }
  0x1d   :  { %159 = vmatpush.msra.mxu1 %v146_v11  ;;  %v138_v29 = vld [vmem:[#allocation7 + $0x18] sm:$0xff]  ;;  %v137_v30 = vld [vmem:[#allocation7 + $0x10] sm:$0xff]  ;;  %v136_v31 = vld [vmem:[#allocation7 + $0x8] sm:$0xff] }
  0x1e   :  { %114 = vmatpush.msra.mxu0 %v99_v8  ;;  %v135_v32 = vld [vmem:[#allocation7] sm:$0xff]  ;;  %v196_v33 = vld [vmem:[#allocation8 + $0x78] sm:$0xff]  ;;  %v195_v34 = vld [vmem:[#allocation8 + $0x70] sm:$0xff] }
  0x1f   :  { %160 = vmatpush.msra.mxu1 %v145_v13  ;;  %201 = vmatpush.msra.mxu2 %v196_v33  ;;  %v194_v35 = vld [vmem:[#allocation8 + $0x68] sm:$0xff]  ;;  %v193_v36 = vld [vmem:[#allocation8 + $0x60] sm:$0xff]  ;;  %v192_v37 = vld [vmem:[#allocation8 + $0x58] sm:$0xff] }
  0x20   :  { %115 = vmatpush.msra.mxu0 %v98_v10  ;;  %v191_v38 = vld [vmem:[#allocation8 + $0x50] sm:$0xff]  ;;  %v190_v39 = vld [vmem:[#allocation8 + $0x48] sm:$0xff]  ;;  %v250_v40 = vld [vmem:[%s458_s2] ss:$0 sm:$0xff] }
  0x21   :  { %161 = vmatpush.msra.mxu1 %v144_v15  ;;  %202 = vmatpush.msra.mxu2 %v195_v34  ;;  %v189_v48 = vld [vmem:[#allocation8 + $0x40] sm:$0xff]  ;;  %v188_v49 = vld [vmem:[#allocation8 + $0x38] sm:$0xff]  ;;  %v187_v50 = vld [vmem:[#allocation8 + $0x30] sm:$0xff] }
  0x22   :  { %116 = vmatpush.msra.mxu0 %v97_v12  ;;  %v186_v51 = vld [vmem:[#allocation8 + $0x28] sm:$0xff]  ;;  %v185_v52 = vld [vmem:[#allocation8 + $0x20] sm:$0xff]  ;;  %v184_v53 = vld [vmem:[#allocation8 + $0x18] sm:$0xff] }
  0x23   :  { %162 = vmatpush.msra.mxu1 %v143_v24  ;;  %203 = vmatpush.msra.mxu2 %v194_v35  ;;  %v183_v54 = vld [vmem:[#allocation8 + $0x10] sm:$0xff]  ;;  %v182_v55 = vld [vmem:[#allocation8 + $0x8] sm:$0xff]  ;;  %v181_v56 = vld [vmem:[#allocation8] sm:$0xff] }
  0x24   :  { %117 = vmatpush.msra.mxu0 %v96_v14  ;;  %v251_v57 = vld [vmem:[%s460_s4] ss:$0 sm:$0xff]  ;;  %s229_s4 = sshll.u32 %s463_s7, 4  ;;  %s230_s4 = int_to_ptr.hbm [resolvable:$true] %s229_s4 }
  0x25   :  { %163 = vmatpush.msra.mxu1 %v142_v25  ;;  %204 = vmatpush.msra.mxu2 %v193_v36  ;;  %v252_v1 = vld [vmem:[%s462_s6] ss:$0 sm:$0xff] }
  0x26   :  { %118 = vmatpush.msra.mxu0 %v95_v16 }
  0x27   :  { %164 = vmatpush.msra.mxu1 %v141_v26  ;;  %205 = vmatpush.msra.mxu2 %v192_v37 }
  0x28   :  { %119 = vmatpush.msra.mxu0 %v94_v17 }
  0x29   :  { %165 = vmatpush.msra.mxu1 %v140_v27  ;;  %206 = vmatpush.msra.mxu2 %v191_v38 }
  0x2a   :  { %120 = vmatpush.msra.mxu0 %v93_v18 }
  0x2b   :  { %166 = vmatpush.msra.mxu1 %v139_v28  ;;  %207 = vmatpush.msra.mxu2 %v190_v39 }
  0x2c   :  { %121 = vmatpush.msra.mxu0 %v92_v19 }
  0x2d   :  { %167 = vmatpush.msra.mxu1 %v138_v29  ;;  %208 = vmatpush.msra.mxu2 %v189_v48 }
  0x2e   :  { %122 = vmatpush.msra.mxu0 %v91_v20 }
  0x2f   :  { %168 = vmatpush.msra.mxu1 %v137_v30  ;;  %209 = vmatpush.msra.mxu2 %v188_v49 }
  0x30   :  { %123 = vmatpush.msra.mxu0 %v90_v21 }
  0x31   :  { %169 = vmatpush.msra.mxu1 %v136_v31  ;;  %210 = vmatpush.msra.mxu2 %v187_v50 }
  0x32   :  { %124 = vmatpush.msra.mxu0 %v89_v22 }
  0x33   :  { %125 = vmatmul.f32.vlgmr.msra.gmra.mxu0 %v88_v23  ;;  %170 = vmatpush.msra.mxu1 %v135_v32 }
  0x34   :  { %211 = vmatpush.msra.mxu2 %v186_v51 }
  0x36   :  { %212 = vmatpush.msra.mxu2 %v185_v52 }
  0x38   :  { %213 = vmatpush.msra.mxu2 %v184_v53 }
  0x3a   :  { %214 = vmatpush.msra.mxu2 %v183_v54 }
  0x3c   :  { %215 = vmatpush.msra.mxu2 %v182_v55 }
  0x3e   :  { %216 = vmatpush.msra.mxu2 %v181_v56 }
  0xb0   :  { %v126_v41 = vpop.f32.mrf.mxu0 }
  0xb1   :  { %v127_v42 = vadd.f32 %v250_v40, %v126_v41 }
  0xb3   :  { %v130_v43 = vmin.f32 %v127_v42, 0.0  ;;  %vm129_vm0 = vcmp.gt.f32.partialorder %v127_v42, 0.0 }
  0xb5   :  { %v131_v44 = vmul.f32 1.442695, %v130_v43 }
  0xb7   :  { %253 = vpow2.f32 %v131_v44 }
  0xbd   :  { %v254_v45 = vpop.eup %253 }
  0xbe   :  { %v241_v46 = vadd.f32 -1.0, %v254_v45 }
  0xc0   :  { %v134_v47 = vsel %vm129_vm0, %v127_v42, %v241_v46 }
  0xc1   :  { %171 = vmatmul.f32.vlgmr.msra.gmra.mxu1 %v134_v47 }
 0x13e   :  { %v172_v58 = vpop.f32.mrf.mxu1 }
 0x13f   :  { %v173_v59 = vadd.f32 %v251_v57, %v172_v58 }
 0x141   :  { %v176_v60 = vmin.f32 %v173_v59, 0.0  ;;  %vm175_vm1 = vcmp.gt.f32.partialorder %v173_v59, 0.0 }
 0x143   :  { %v177_v61 = vmul.f32 1.442695, %v176_v60 }
 0x145   :  { %255 = vpow2.f32 %v177_v61 }
 0x14b   :  { %v256_v62 = vpop.eup %255 }
 0x14c   :  { %v242_v63 = vadd.f32 -1.0, %v256_v62 }
 0x14e   :  { %v180_v0 = vsel %vm175_vm1, %v173_v59, %v242_v63 }
 0x14f   :  { %217 = vmatmul.f32.vlgmr.msra.gmra.mxu2 %v180_v0 }
 0x1d2   :  { %v218_v2 = vpop.f32.mrf.mxu2 }
 0x1d3   :  { %v219_v3 = vadd.f32 %v252_v1, %v218_v2 }
 0x1d5   :  { %221 = vst [vmem:[#allocation10] sm:$0xff] %v219_v3 }
 0x1d6   :  { %232 = dma.vmem_to_hbm [thread:$0]  %s228_s25, 128, %s230_s4, [#allocation4]  }
 0x1d7   :  { %383 = dma.done.wait [#allocation4], 128  }
 0x1d8   :  { %384 = vsyncadd [#allocation4], 4294967168 }
 0x1d9   :  { %237 = vsyncpa [#allocation3], 1 }
 0x1da   :  { %238 = vsyncpa [#allocation6], 1 }
 0x1db   :  { %239 = vsyncpa [#allocation9], 1 }
 0x1dc   :  { %240 = vsyncpa [#allocation4], 1 }

</bundles_post_ra>
